<compile_context>
chip_gen: v7x
topology: tpu7x:2x2x1
jax: 0.10.0
libtpu: 0.0.40
codegen_flags: <defaults>
</compile_context>

<pallas_src>
import functools
import math

import jax
import jax.numpy as jnp
import numpy as np
from jax import lax
from jax.experimental import pallas as pl
from jax.experimental.pallas import tpu as pltpu

# ----- MX 'int8' format constants -------------------------------------------
BLOCK_SIZE = 32                                   # MX block size
ELEM_BITS = 8                                     # 'int8': sign + 1 int + 6 frac
FRAC_BITS = ELEM_BITS - 2                         # 6
MAX_INT = 2.0 ** (ELEM_BITS - 1) - 1.0            # 127 (integer-domain clip)
LSB = 2.0 ** -FRAC_BITS                           # 1/64
INV_LSB = 2.0 ** FRAC_BITS                        # 64
MAX_NORM = MAX_INT * LSB                          # 127/64
SCALE_EMAX = 127.0                                # E8M0 max exponent
FP32_MIN_NORMAL = 2.0 ** -126

# ----- tiling knobs ----------------------------------------------------------
_TARGET_BLOCK_BYTES = 2 * 1024 * 1024             # ~2 MiB f32 input block
_VMEM_LIMIT = 32 * 1024 * 1024


def _round_up(n, m):
    return -(-n // m) * m


# ----- shared element-wise fake-quant math (no EUP transcendentals) ----------
def _mx_fakequant(x, amax):
    """Fake-quantize f32 `x` given the (broadcastable) per-MX-block abs max.

    The shared exponent E = floor(log2(amax)) is read directly from the f32
    exponent field (exact), and the scales 2^(6-E) / 2^(E-6) are rebuilt by
    composing exponent bits.  The quantum's exponent field is clamped to >= 1
    so both composed scales stay normal f32; this only coarsens quantization
    for |amax| < 2^-120 (all-zero blocks still round-trip to exactly 0).
    """
    e_b = pltpu.bitcast(amax, jnp.int32) >> 23                  # biased exp, [0, 255]
    qexp = jnp.maximum(e_b - FRAC_BITS, 1)                      # exp field of 2^(E-6)
    quantum = pltpu.bitcast(qexp << 23, jnp.float32)            # 2^(E-6)
    descale = pltpu.bitcast((254 - qexp) << 23, jnp.float32)    # 2^(6-E)

    q = lax.round(x * descale, lax.RoundingMethod.AWAY_FROM_ZERO)
    q = jnp.clip(q, -MAX_INT, MAX_INT)
    out = q * quantum
    # blocks whose max is Inf/NaN get a NaN shared exponent (matches the ref) ...
    out = jnp.where(e_b == 255, jnp.nan, out)
    # ... but +-Inf elements themselves pass straight through.
    return jnp.where(jnp.isinf(x), x, out)


# ----- kernel #1: quant axis on lanes (axis == -1) ---------------------------
def _mxint8_lane_kernel(x_ref, o_ref):
    lanes = x_ref.shape[-1]                       # static block width, % 32 == 0
    x = x_ref[...].astype(jnp.float32)
    a = jnp.abs(x)

    # Segmented max over each 32-lane MX block: 5-step masked cyclic butterfly
    # built from pltpu.roll (XLU slot).  Masks depend only on the lane index
    # and are hoisted out of the reduction loop.
    pos = lax.broadcasted_iota(jnp.int32, (1, lanes), 1) & (BLOCK_SIZE - 1)
    shifts = (1, 2, 4, 8, 16)
    masks = [pos < (BLOCK_SIZE - s) for s in shifts]
    for s, m in zip(shifts, masks):
        fwd = pltpu.roll(a, lanes - s, axis=1)          # value at lane i + s
        wrap = pltpu.roll(a, BLOCK_SIZE - s, axis=1)    # value at lane i + s - 32
        a = jnp.maximum(a, jnp.where(m, fwd, wrap))

    o_ref[...] = _mx_fakequant(x, a).astype(o_ref.dtype)


# ----- kernel #2: quant axis on sublanes (axis != -1, no transpose) ----------
def _mxint8_sublane_kernel(x_ref, o_ref):
    x = x_ref[...].astype(jnp.float32)                   # (ga, 32, tl)
    amax = jnp.max(jnp.abs(x), axis=1, keepdims=True)    # (ga, 1, tl) block max
    o_ref[...] = _mx_fakequant(x, amax).astype(o_ref.dtype)


# ----- wrappers --------------------------------------------------------------
def _pick_view_width(n):
    """Largest lane-dense row width (multiple of 128 and 32) dividing n."""
    for c in (512, 256, 128):
        if n % c == 0:
            return c
    return None


def _quantize_last_axis(x):
    shape = x.shape
    length = shape[-1]
    lead = math.prod(shape[:-1]) if len(shape) > 1 else 1
    lpad = _round_up(length, BLOCK_SIZE)

    x2 = x.reshape(lead, length)
    if lpad != length:
        # Zero-pad the quant axis to whole MX blocks (matches the reference).
        # This is the only HBM copy and only happens for misaligned lengths.
        x2 = jnp.pad(x2, ((0, 0), (0, lpad - length)))
    n = lead * lpad

    width = _pick_view_width(n)
    if width is not None:
        # Free row-major reshape: every kernel row holds width//32 whole blocks.
        xv = x2.reshape(n // width, width)
        block_w = width
    else:
        # Awkward total size: keep the (lead, lpad) view and tile the lane axis.
        xv = x2
        block_w = min(512, _round_up(lpad, 128))
    rows = xv.shape[0]

    tm = max(32, min(_round_up(rows, 32), _TARGET_BLOCK_BYTES // (block_w * 4)))
    grid = (pl.cdiv(rows, tm), pl.cdiv(xv.shape[1], block_w))

    out = pl.pallas_call(
        _mxint8_lane_kernel,
        out_shape=jax.ShapeDtypeStruct(xv.shape, x.dtype),
        grid=grid,
        in_specs=[pl.BlockSpec((tm, block_w), lambda i, j: (i, j))],
        out_specs=pl.BlockSpec((tm, block_w), lambda i, j: (i, j)),
        compiler_params=pltpu.CompilerParams(
            dimension_semantics=("parallel", "parallel"),
            vmem_limit_bytes=_VMEM_LIMIT),
    )(xv)

    out = out.reshape(lead, lpad)
    if lpad != length:
        out = out[:, :length]
    return out.reshape(shape)


def _quantize_middle_axis(x, ax):
    shape = x.shape
    pre = math.prod(shape[:ax]) if ax > 0 else 1
    adim = shape[ax]
    post = math.prod(shape[ax + 1:])
    apad = _round_up(adim, BLOCK_SIZE)

    x3 = x.reshape(pre, adim, post)
    if apad != adim:
        # zero-pad the quant axis to whole MX blocks (matches the reference)
        x3 = jnp.pad(x3, ((0, 0), (0, apad - adim), (0, 0)))
    groups = apad // BLOCK_SIZE
    x4 = x3.reshape(pre, groups, BLOCK_SIZE, post)        # free reshape

    tl = min(512, _round_up(post, 128))
    ga = max(1, min(groups, _TARGET_BLOCK_BYTES // (BLOCK_SIZE * tl * 4)))
    grid = (pre, pl.cdiv(groups, ga), pl.cdiv(post, tl))
    # TODO(synk): when `pre` is large and groups*post is small, block the
    # leading axis as well so per-grid-step overhead stays amortized.

    out4 = pl.pallas_call(
        _mxint8_sublane_kernel,
        out_shape=jax.ShapeDtypeStruct(x4.shape, x.dtype),
        grid=grid,
        in_specs=[pl.BlockSpec((None, ga, BLOCK_SIZE, tl),
                               lambda p, g, t: (p, g, 0, t))],
        out_specs=pl.BlockSpec((None, ga, BLOCK_SIZE, tl),
                               lambda p, g, t: (p, g, 0, t)),
        compiler_params=pltpu.CompilerParams(
            dimension_semantics=("parallel", "parallel", "parallel"),
            vmem_limit_bytes=_VMEM_LIMIT),
    )(x4)

    out3 = out4.reshape(pre, apad, post)
    if apad != adim:
        out3 = out3[:, :adim, :]
    return out3.reshape(shape)


@functools.partial(jax.jit, static_argnames=("axis",))
def quantize_mx_int8(x, axis):
    x = jnp.asarray(x)
    if x.dtype not in (jnp.float32, jnp.bfloat16):
        # other dtypes fall back to f32 compute / f32 output
        x = x.astype(jnp.float32)
    ax = axis % x.ndim
    post = math.prod(x.shape[ax + 1:])
    if ax == x.ndim - 1 or post == 1:
        # quant axis is (effectively) minor-most -> lane-segmented kernel
        xl = x.reshape(x.shape[:ax + 1]) if post == 1 and ax != x.ndim - 1 else x
        return _quantize_last_axis(xl).reshape(x.shape)
    # keep the native layout (no XLA transpose): MX blocks live on sublanes
    return _quantize_middle_axis(x, ax)


class SimpleMXINT8:
    """JAX/Pallas counterpart of the PyTorch SimpleMXINT8 module (stateless)."""

    def __init__(self, axis: int):
        self.axis = axis

    def __call__(self, x):
        return quantize_mx_int8(x, self.axis)


# ----- pure-jnp reference (mirrors the torch quantize_mx('int8') math) -------
def _ref_quantize_mx_int8(x, axis):
    x = jnp.asarray(x, jnp.float32)
    ax = axis % x.ndim
    xm = jnp.moveaxis(x, ax, -1)
    length = xm.shape[-1]
    lpad = _round_up(length, BLOCK_SIZE)
    xm = jnp.pad(xm, [(0, 0)] * (xm.ndim - 1) + [(0, lpad - length)])
    xb = xm.reshape(xm.shape[:-1] + (lpad // BLOCK_SIZE, BLOCK_SIZE))
    amax = jnp.max(jnp.abs(xb), axis=-1, keepdims=True)
    # exact floor(log2(amax)) via exponent-field extraction; identical to the
    # torch floor(log2(.)) except for 1-ulp-below-power-of-two corner cases
    e_b = lax.bitcast_convert_type(amax, jnp.int32) >> 23
    se = (e_b - 127).astype(jnp.float32)
    se = jnp.where(e_b == 255, jnp.nan, se)
    se = jnp.maximum(se, -SCALE_EMAX)
    xs = (xb * jnp.exp2(-se)) * INV_LSB
    xs = jnp.sign(xs) * jnp.floor(jnp.abs(xs) + 0.5)
    xs = jnp.clip(xs * LSB, -MAX_NORM, MAX_NORM) * jnp.exp2(se)
    xs = jnp.where(jnp.isinf(xb), xb, xs)
    out = xs.reshape(xm.shape)[..., :length]
    return jnp.moveaxis(out, -1, ax)


if __name__ == "__main__":
    key = jax.random.PRNGKey(0)
    k1, k2, k3, k4 = jax.random.split(key, 4)

    x_a = 3.0 * jax.random.normal(k1, (2, 4, 96), dtype=jnp.float32)   # (B, C, L)
    x_b = jax.random.normal(k2, (64, 1024), dtype=jnp.float32)         # aligned 2-D
    x_c = jax.random.normal(k3, (3, 50), dtype=jnp.float32)            # ragged everything

    cases = [
        (x_a, -1), (x_a, 1), (x_a, 0),
        (x_b, -1), (x_b, 0),
        (x_c, -1), (x_c, 0),
    ]
    for x, axis in cases:
        mod = SimpleMXINT8(axis=axis)
        y = jax.block_until_ready(mod(x))
        y_ref = jax.block_until_ready(_ref_quantize_mx_int8(x, axis))
        assert y.shape == x.shape and y.dtype == x.dtype
        np.testing.assert_allclose(np.asarray(y), np.asarray(y_ref),
                                   rtol=1e-5, atol=1e-6)

    # bf16 input read natively by the kernel; output keeps the input dtype.
    x_bf = (3.0 * jax.random.normal(k4, (2, 4, 96))).astype(jnp.bfloat16)
    y_bf = jax.block_until_ready(SimpleMXINT8(-1)(x_bf))
    assert y_bf.shape == x_bf.shape and y_bf.dtype == jnp.bfloat16
    y_bf_ref = _ref_quantize_mx_int8(x_bf, -1).astype(jnp.bfloat16)
    np.testing.assert_allclose(np.asarray(y_bf.astype(jnp.float32)),
                               np.asarray(y_bf_ref.astype(jnp.float32)),
                               rtol=2e-2, atol=2e-2)

    print("KERNEL_OK")
</pallas_src>

<mosaic_0001>
module attributes {stable_mosaic.version = 11 : i64} {
  func.func @_mxint8_lane_kernel(%arg0: i32, %arg1: i32, %arg2: memref<32x256xf32, #tpu.memory_space<vmem>>, %arg3: memref<32x256xf32, #tpu.memory_space<vmem>>) attributes {dimension_semantics = [#tpu.dimension_semantics<parallel>, #tpu.dimension_semantics<parallel>], iteration_bounds = array<i64: 1, 1>, scalar_prefetch = 0 : i64, scratch_operands = 0 : i64, tpu.core_type = #tpu.core_type<tc>, window_params = [{transform_indices = @transform_0, window_bounds = array<i64: 32, 256>}, {transform_indices = @transform_1, window_bounds = array<i64: 32, 256>}]} {
    %c0 = arith.constant 0 : index
    %c0_0 = arith.constant 0 : index
    %0 = vector.load %arg2[%c0, %c0_0] : memref<32x256xf32, #tpu.memory_space<vmem>>, vector<32x256xf32>
    %1 = math.absf %0 : vector<32x256xf32>
    %2 = tpu.iota {dimensions = array<i32: 1>} : vector<1x256xi32>
    %c31_i32 = arith.constant 31 : i32
    %3 = vector.broadcast %c31_i32 : i32 to vector<1x256xi32>
    %4 = arith.andi %2, %3 : vector<1x256xi32>
    %c31_i32_1 = arith.constant 31 : i32
    %5 = vector.broadcast %c31_i32_1 : i32 to vector<1x256xi32>
    %6 = arith.cmpi slt, %4, %5 : vector<1x256xi32>
    %c30_i32 = arith.constant 30 : i32
    %7 = vector.broadcast %c30_i32 : i32 to vector<1x256xi32>
    %8 = arith.cmpi slt, %4, %7 : vector<1x256xi32>
    %c28_i32 = arith.constant 28 : i32
    %9 = vector.broadcast %c28_i32 : i32 to vector<1x256xi32>
    %10 = arith.cmpi slt, %4, %9 : vector<1x256xi32>
    %c24_i32 = arith.constant 24 : i32
    %11 = vector.broadcast %c24_i32 : i32 to vector<1x256xi32>
    %12 = arith.cmpi slt, %4, %11 : vector<1x256xi32>
    %c16_i32 = arith.constant 16 : i32
    %13 = vector.broadcast %c16_i32 : i32 to vector<1x256xi32>
    %14 = arith.cmpi slt, %4, %13 : vector<1x256xi32>
    %c255_i32 = arith.constant 255 : i32
    %15 = tpu.dynamic_rotate %1 by %c255_i32 dim 1 : vector<32x256xf32>, i32 -> vector<32x256xf32>
    %c31_i32_2 = arith.constant 31 : i32
    %16 = tpu.dynamic_rotate %1 by %c31_i32_2 dim 1 : vector<32x256xf32>, i32 -> vector<32x256xf32>
    %17 = vector.shape_cast %6 : vector<1x256xi1> to vector<1x256xi1>
    %18 = vector.broadcast %17 : vector<1x256xi1> to vector<32x256xi1>
    %19 = arith.select %18, %15, %16 : vector<32x256xi1>, vector<32x256xf32>
    %20 = arith.maximumf %1, %19 : vector<32x256xf32>
    %c254_i32 = arith.constant 254 : i32
    %21 = tpu.dynamic_rotate %20 by %c254_i32 dim 1 : vector<32x256xf32>, i32 -> vector<32x256xf32>
    %c30_i32_3 = arith.constant 30 : i32
    %22 = tpu.dynamic_rotate %20 by %c30_i32_3 dim 1 : vector<32x256xf32>, i32 -> vector<32x256xf32>
    %23 = vector.shape_cast %8 : vector<1x256xi1> to vector<1x256xi1>
    %24 = vector.broadcast %23 : vector<1x256xi1> to vector<32x256xi1>
    %25 = arith.select %24, %21, %22 : vector<32x256xi1>, vector<32x256xf32>
    %26 = arith.maximumf %20, %25 : vector<32x256xf32>
    %c252_i32 = arith.constant 252 : i32
    %27 = tpu.dynamic_rotate %26 by %c252_i32 dim 1 : vector<32x256xf32>, i32 -> vector<32x256xf32>
    %c28_i32_4 = arith.constant 28 : i32
    %28 = tpu.dynamic_rotate %26 by %c28_i32_4 dim 1 : vector<32x256xf32>, i32 -> vector<32x256xf32>
    %29 = vector.shape_cast %10 : vector<1x256xi1> to vector<1x256xi1>
    %30 = vector.broadcast %29 : vector<1x256xi1> to vector<32x256xi1>
    %31 = arith.select %30, %27, %28 : vector<32x256xi1>, vector<32x256xf32>
    %32 = arith.maximumf %26, %31 : vector<32x256xf32>
    %c248_i32 = arith.constant 248 : i32
    %33 = tpu.dynamic_rotate %32 by %c248_i32 dim 1 : vector<32x256xf32>, i32 -> vector<32x256xf32>
    %c24_i32_5 = arith.constant 24 : i32
    %34 = tpu.dynamic_rotate %32 by %c24_i32_5 dim 1 : vector<32x256xf32>, i32 -> vector<32x256xf32>
    %35 = vector.shape_cast %12 : vector<1x256xi1> to vector<1x256xi1>
    %36 = vector.broadcast %35 : vector<1x256xi1> to vector<32x256xi1>
    %37 = arith.select %36, %33, %34 : vector<32x256xi1>, vector<32x256xf32>
    %38 = arith.maximumf %32, %37 : vector<32x256xf32>
    %c240_i32 = arith.constant 240 : i32
    %39 = tpu.dynamic_rotate %38 by %c240_i32 dim 1 : vector<32x256xf32>, i32 -> vector<32x256xf32>
    %c16_i32_6 = arith.constant 16 : i32
    %40 = tpu.dynamic_rotate %38 by %c16_i32_6 dim 1 : vector<32x256xf32>, i32 -> vector<32x256xf32>
    %41 = vector.shape_cast %14 : vector<1x256xi1> to vector<1x256xi1>
    %42 = vector.broadcast %41 : vector<1x256xi1> to vector<32x256xi1>
    %43 = arith.select %42, %39, %40 : vector<32x256xi1>, vector<32x256xf32>
    %44 = arith.maximumf %38, %43 : vector<32x256xf32>
    %45 = tpu.bitcast %44 : vector<32x256xf32> -> vector<32x256xi32>
    %c23_i32 = arith.constant 23 : i32
    %46 = vector.broadcast %c23_i32 : i32 to vector<32x256xi32>
    %47 = arith.shrsi %45, %46 : vector<32x256xi32>
    %c6_i32 = arith.constant 6 : i32
    %48 = vector.broadcast %c6_i32 : i32 to vector<32x256xi32>
    %49 = arith.subi %47, %48 : vector<32x256xi32>
    %c1_i32 = arith.constant 1 : i32
    %50 = vector.broadcast %c1_i32 : i32 to vector<32x256xi32>
    %51 = arith.maxsi %49, %50 : vector<32x256xi32>
    %c23_i32_7 = arith.constant 23 : i32
    %52 = vector.broadcast %c23_i32_7 : i32 to vector<32x256xi32>
    %53 = arith.shli %51, %52 : vector<32x256xi32>
    %54 = tpu.bitcast %53 : vector<32x256xi32> -> vector<32x256xf32>
    %c254_i32_8 = arith.constant 254 : i32
    %55 = vector.broadcast %c254_i32_8 : i32 to vector<32x256xi32>
    %56 = arith.subi %55, %51 : vector<32x256xi32>
    %c23_i32_9 = arith.constant 23 : i32
    %57 = vector.broadcast %c23_i32_9 : i32 to vector<32x256xi32>
    %58 = arith.shli %56, %57 : vector<32x256xi32>
    %59 = tpu.bitcast %58 : vector<32x256xi32> -> vector<32x256xf32>
    %60 = arith.mulf %0, %59 : vector<32x256xf32>
    %61 = math.round %60 : vector<32x256xf32>
    %cst = arith.constant -1.270000e+02 : f32
    %cst_10 = arith.constant 1.270000e+02 : f32
    %62 = vector.broadcast %cst : f32 to vector<32x256xf32>
    %63 = arith.maximumf %62, %61 : vector<32x256xf32>
    %64 = vector.broadcast %cst_10 : f32 to vector<32x256xf32>
    %65 = arith.minimumf %64, %63 : vector<32x256xf32>
    %66 = arith.mulf %65, %54 : vector<32x256xf32>
    %c255_i32_11 = arith.constant 255 : i32
    %67 = vector.broadcast %c255_i32_11 : i32 to vector<32x256xi32>
    %68 = arith.cmpi eq, %47, %67 : vector<32x256xi32>
    %cst_12 = arith.constant 0x7FC00000 : f32
    %69 = vector.broadcast %cst_12 : f32 to vector<32x256xf32>
    %70 = arith.select %68, %69, %66 : vector<32x256xi1>, vector<32x256xf32>
    %71 = math.absf %0 : vector<32x256xf32>
    %cst_13 = arith.constant 0x7F800000 : f32
    %72 = vector.broadcast %cst_13 : f32 to vector<32x256xf32>
    %73 = arith.cmpf oeq, %71, %72 : vector<32x256xf32>
    %74 = arith.select %73, %0, %70 : vector<32x256xi1>, vector<32x256xf32>
    %c0_14 = arith.constant 0 : index
    %c0_15 = arith.constant 0 : index
    %75 = vector.load %arg3[%c0_14, %c0_15] : memref<32x256xf32, #tpu.memory_space<vmem>>, vector<32x256xf32>
    tpu.vector_store %arg3[%c0_14, %c0_15], %74 {strides = array<i32>} : memref<32x256xf32, #tpu.memory_space<vmem>>, vector<32x256xf32>,
    return
  }
  func.func @transform_0(%arg0: i32, %arg1: i32) -> (i32, i32) {
    %c0_i32 = arith.constant 0 : i32
    return %arg0, %arg1 : i32, i32
  }
  func.func @transform_1(%arg0: i32, %arg1: i32) -> (i32, i32) {
    %c0_i32 = arith.constant 0 : i32
    return %arg0, %arg1 : i32, i32
  }
}

</mosaic_0001>

<bundles_post_ra>
// kernel: quantize_mx_int8.1
= control target key start
LH: loop header
LB: loop body
LE: loop exit
PB: predicated region body
PF: predicated region fallthrough
CT: control target
= control target key end

     0   :  { %s927_s10 = smov 31   ;;  %s928_s11 = smov 127   ;;  %v24_v6 = vlaneseq  ;;  %s999_s0 = inlined_call_operand.vmem [shape: f32[3,256], index: 0, kind: input, shape index: {}]   ;;  %s1000_s1 = inlined_call_operand.vmem [shape: f32[3,256], index: 1, kind: output, shape index: {}]  }
   0x1   :  { %v950_v0 = vld [vmem:[%s999_s0] sm:$0xff]  ;;  %v955_v1 = vld [vmem:[%s999_s0 + $0x8] sm:$0xff]  ;;  %s929_s0 = smov 126   ;;  %s930_s12 = smov 30  }
   0x2   :  { %v958_v2 = vand.u32 2147483647, %v950_v0  ;;  %v17_v3 = vand.u32 2147483647, %v955_v1  ;;  %v963_v7 = vand.u32 127, %v24_v6  ;;  %s931_s13 = smov 124  }
   0x3   :  { %s932_s14 = smov 28   ;;  %s933_s15 = smov 120  }
   0x4   :  { %v47_v4 = vcombine.low %v958_v2, %v17_v3  ;;  %v48_v5 = vcombine.high %v958_v2, %v17_v3  ;;  %v26_v8 = vadd.s32 128, %v963_v7  ;;  %v967_v9 = vand.u32 31, %v963_v7  ;;  %s934_s16 = smov 24   ;;  %s935_s17 = smov 112  }
   0x5   :  { %vm104_vm0 = vcmp.lt.s32.totalorder %v963_v7, 31  ;;  %vm79_vm1 = vcmp.lt.s32.totalorder %v963_v7, 127  ;;  %vm197_vm4 = vcmp.lt.s32.totalorder %v963_v7, 126  ;;  %vm222_vm5 = vcmp.lt.s32.totalorder %v963_v7, 30  ;;  %s936_s18 = smov 16  }
   0x6   :  { %88 = vrot.lane.b32.xlu1 %v47_v4, %s927_s10  ;;  %63 = vrot.lane.b32.xlu0 %v47_v4, %s928_s11  ;;  %v969_v10 = vand.u32 31, %v26_v8  ;;  %vm29_vm2 = vcmp.lt.s32.totalorder %v967_v9, 31  ;;  %vm31_vm6 = vcmp.lt.s32.totalorder %v967_v9, 30  ;;  %vm315_vm8 = vcmp.lt.s32.totalorder %v963_v7, 124 }
   0x7   :  { %vm340_vm9 = vcmp.lt.s32.totalorder %v963_v7, 28  ;;  %vm33_vm10 = vcmp.lt.s32.totalorder %v967_v9, 28  ;;  %vm433_vm12 = vcmp.lt.s32.totalorder %v963_v7, 120  ;;  %vm458_vm13 = vcmp.lt.s32.totalorder %v963_v7, 24 }
   0x8   :  { %vm30_vm3 = vcmp.lt.s32.totalorder %v969_v10, 31  ;;  %vm32_vm7 = vcmp.lt.s32.totalorder %v969_v10, 30  ;;  %vm34_vm11 = vcmp.lt.s32.totalorder %v969_v10, 28  ;;  %vm35_vm14 = vcmp.lt.s32.totalorder %v967_v9, 24 }
   0x9   :  { %vm36_vm15 = vcmp.lt.s32.totalorder %v969_v10, 24 }
   0xa   :  { %96 = vrot.lane.b32.xlu1 %v48_v5, %s927_s10  ;;  %71 = vrot.lane.b32.xlu0 %v48_v5, %s928_s11 }
  0x78   :  { %v89_v11 = vpop.permute.xlu1 %88  ;;  %v64_v12 = vpop.permute.xlu0 %63 }
  0x7c   :  { %v97_v13 = vpop.permute.xlu1 %96  ;;  %v72_v14 = vpop.permute.xlu0 %71 }
  0x7d   :  { %v105_v15 = vsel %vm104_vm0, %v89_v11, %v97_v13  ;;  %v109_v16 = vsel %vm104_vm0, %v97_v13, %v89_v11  ;;  %v80_v17 = vsel %vm79_vm1, %v64_v12, %v72_v14  ;;  %v84_v18 = vsel %vm79_vm1, %v72_v14, %v64_v12 }
  0x7e   :  { %v117_v19 = vsel %vm29_vm2, %v80_v17, %v109_v16  ;;  %v118_v20 = vsel %vm30_vm3, %v84_v18, %v105_v15  ;;  %vm551_vm0 = vcmp.lt.s32.totalorder %v963_v7, 112  ;;  %vm576_vm1 = vcmp.lt.s32.totalorder %v963_v7, 16 }
  0x7f   :  { %v133_v21 = vcombine.low %v117_v19, %v118_v20  ;;  %v134_v22 = vcombine.high %v117_v19, %v118_v20  ;;  %vm37_vm2 = vcmp.lt.s32.totalorder %v967_v9, 16  ;;  %vm38_vm3 = vcmp.lt.s32.totalorder %v969_v10, 16 }
  0x81   :  { %v149_v23 = vmax.f32 %v958_v2, %v133_v21  ;;  %v150_v24 = vmax.f32 %v17_v3, %v134_v22 }
  0x83   :  { %v166_v25 = vcombine.high %v149_v23, %v150_v24  ;;  %v165_v26 = vcombine.low %v149_v23, %v150_v24 }
  0x85   :  { %189 = vrot.lane.b32.xlu1 %v166_v25, %s929_s0  ;;  %181 = vrot.lane.b32.xlu0 %v165_v26, %s929_s0 }
  0x89   :  { %214 = vrot.lane.b32.xlu1 %v166_v25, %s930_s12  ;;  %206 = vrot.lane.b32.xlu0 %v165_v26, %s930_s12 }
  0xf7   :  { %v190_v27 = vpop.permute.xlu1 %189  ;;  %v182_v28 = vpop.permute.xlu0 %181 }
  0xf8   :  { %v198_v31 = vsel %vm197_vm4, %v182_v28, %v190_v27  ;;  %v202_v32 = vsel %vm197_vm4, %v190_v27, %v182_v28 }
  0xfb   :  { %v215_v29 = vpop.permute.xlu1 %214  ;;  %v207_v30 = vpop.permute.xlu0 %206 }
  0xfc   :  { %v223_v33 = vsel %vm222_vm5, %v207_v30, %v215_v29  ;;  %v227_v34 = vsel %vm222_vm5, %v215_v29, %v207_v30 }
  0xfd   :  { %v235_v35 = vsel %vm31_vm6, %v198_v31, %v227_v34  ;;  %v236_v36 = vsel %vm32_vm7, %v202_v32, %v223_v33 }
  0xfe   :  { %v251_v37 = vcombine.low %v235_v35, %v236_v36  ;;  %v252_v38 = vcombine.high %v235_v35, %v236_v36 }
 0x100   :  { %v267_v39 = vmax.f32 %v149_v23, %v251_v37  ;;  %v268_v40 = vmax.f32 %v150_v24, %v252_v38 }
 0x102   :  { %v284_v41 = vcombine.high %v267_v39, %v268_v40  ;;  %v283_v42 = vcombine.low %v267_v39, %v268_v40 }
 0x104   :  { %307 = vrot.lane.b32.xlu1 %v284_v41, %s931_s13  ;;  %299 = vrot.lane.b32.xlu0 %v283_v42, %s931_s13 }
 0x108   :  { %332 = vrot.lane.b32.xlu1 %v284_v41, %s932_s14  ;;  %324 = vrot.lane.b32.xlu0 %v283_v42, %s932_s14 }
 0x176   :  { %v308_v43 = vpop.permute.xlu1 %307  ;;  %v300_v44 = vpop.permute.xlu0 %299 }
 0x177   :  { %v316_v47 = vsel %vm315_vm8, %v300_v44, %v308_v43  ;;  %v320_v48 = vsel %vm315_vm8, %v308_v43, %v300_v44  ;;  %vm813_vm8 = vcmp.eq.f32.partialorder %v958_v2, inf }
 0x17a   :  { %v333_v45 = vpop.permute.xlu1 %332  ;;  %v325_v46 = vpop.permute.xlu0 %324 }
 0x17b   :  { %v341_v49 = vsel %vm340_vm9, %v325_v46, %v333_v45  ;;  %v345_v50 = vsel %vm340_vm9, %v333_v45, %v325_v46 }
 0x17c   :  { %v353_v51 = vsel %vm33_vm10, %v316_v47, %v345_v50  ;;  %v354_v52 = vsel %vm34_vm11, %v320_v48, %v341_v49 }
 0x17d   :  { %v369_v53 = vcombine.low %v353_v51, %v354_v52  ;;  %v370_v54 = vcombine.high %v353_v51, %v354_v52 }
 0x17f   :  { %v385_v55 = vmax.f32 %v267_v39, %v369_v53  ;;  %v386_v56 = vmax.f32 %v268_v40, %v370_v54 }
 0x181   :  { %v402_v57 = vcombine.high %v385_v55, %v386_v56  ;;  %v401_v58 = vcombine.low %v385_v55, %v386_v56 }
 0x183   :  { %425 = vrot.lane.b32.xlu1 %v402_v57, %s933_s15  ;;  %417 = vrot.lane.b32.xlu0 %v401_v58, %s933_s15 }
 0x187   :  { %450 = vrot.lane.b32.xlu1 %v402_v57, %s934_s16  ;;  %442 = vrot.lane.b32.xlu0 %v401_v58, %s934_s16 }
 0x1f5   :  { %v426_v59 = vpop.permute.xlu1 %425  ;;  %v418_v60 = vpop.permute.xlu0 %417 }
 0x1f6   :  { %v434_v63 = vsel %vm433_vm12, %v418_v60, %v426_v59  ;;  %v438_v3 = vsel %vm433_vm12, %v426_v59, %v418_v60 }
 0x1f9   :  { %v451_v61 = vpop.permute.xlu1 %450  ;;  %v443_v62 = vpop.permute.xlu0 %442 }
 0x1fa   :  { %v459_v4 = vsel %vm458_vm13, %v443_v62, %v451_v61  ;;  %v463_v5 = vsel %vm458_vm13, %v451_v61, %v443_v62 }
 0x1fb   :  { %v471_v6 = vsel %vm35_vm14, %v434_v63, %v463_v5  ;;  %v472_v8 = vsel %vm36_vm15, %v438_v3, %v459_v4 }
 0x1fc   :  { %v487_v11 = vcombine.low %v471_v6, %v472_v8  ;;  %v488_v12 = vcombine.high %v471_v6, %v472_v8 }
 0x1fe   :  { %v503_v13 = vmax.f32 %v385_v55, %v487_v11  ;;  %v504_v14 = vmax.f32 %v386_v56, %v488_v12 }
 0x200   :  { %v520_v15 = vcombine.high %v503_v13, %v504_v14  ;;  %v519_v16 = vcombine.low %v503_v13, %v504_v14 }
 0x202   :  { %543 = vrot.lane.b32.xlu1 %v520_v15, %s935_s17  ;;  %535 = vrot.lane.b32.xlu0 %v519_v16, %s935_s17 }
 0x206   :  { %568 = vrot.lane.b32.xlu1 %v520_v15, %s936_s18  ;;  %560 = vrot.lane.b32.xlu0 %v519_v16, %s936_s18 }
 0x274   :  { %v544_v17 = vpop.permute.xlu1 %543  ;;  %v536_v18 = vpop.permute.xlu0 %535 }
 0x275   :  { %v552_v21 = vsel %vm551_vm0, %v536_v18, %v544_v17  ;;  %v556_v22 = vsel %vm551_vm0, %v544_v17, %v536_v18 }
 0x278   :  { %v569_v19 = vpop.permute.xlu1 %568  ;;  %v561_v20 = vpop.permute.xlu0 %560 }
 0x279   :  { %v577_v23 = vsel %vm576_vm1, %v561_v20, %v569_v19  ;;  %v581_v24 = vsel %vm576_vm1, %v569_v19, %v561_v20 }
 0x27a   :  { %v589_v25 = vsel %vm37_vm2, %v552_v21, %v581_v24  ;;  %v590_v26 = vsel %vm38_vm3, %v556_v22, %v577_v23 }
 0x27b   :  { %v605_v27 = vcombine.low %v589_v25, %v590_v26  ;;  %v606_v28 = vcombine.high %v589_v25, %v590_v26 }
 0x27d   :  { %v621_v29 = vmax.f32 %v503_v13, %v605_v27  ;;  %v622_v30 = vmax.f32 %v504_v14, %v606_v28 }
 0x27f   :  { %v637_v31 = vcombine.low %v621_v29, %v622_v30  ;;  %v638_v32 = vcombine.high %v621_v29, %v622_v30 }
 0x281   :  { %v645_v33 = vshra.s32 %v637_v31, 23  ;;  %v646_v7 = vshra.s32 %v638_v32, 23 }
 0x283   :  { %v901_v34 = vadd.s32 4294967290, %v645_v33  ;;  %v902_v9 = vadd.s32 4294967290, %v646_v7  ;;  %vm773_vm6 = vcmp.eq.s32.totalorder %v645_v33, 255  ;;  %vm774_vm7 = vcmp.eq.s32.totalorder %v646_v7, 255 }
 0x285   :  { %vm661_vm4 = vcmp.gt.s32.totalorder %v901_v34, 1  ;;  %vm663_vm5 = vcmp.gt.s32.totalorder %v902_v9, 1 }
 0x286   :  { %v662_v10 = vsel %vm661_vm4, %v901_v34, 1  ;;  %v664_v35 = vsel %vm663_vm5, %v902_v9, 1 }
 0x287   :  { %v685_v36 = vsub.s32 254, %v662_v10  ;;  %v686_v37 = vsub.s32 254, %v664_v35  ;;  %v677_v42 = vshll.u32 %v662_v10, 23  ;;  %v678_v43 = vshll.u32 %v664_v35, 23 }
 0x289   :  { %v693_v38 = vshll.u32 %v685_v36, 23  ;;  %v694_v39 = vshll.u32 %v686_v37, 23  ;;  %v749_v50 = vcombine.low %v677_v42, %v678_v43  ;;  %v750_v51 = vcombine.high %v677_v42, %v678_v43 }
 0x28b   :  { %v701_v40 = vcombine.low %v693_v38, %v694_v39  ;;  %v702_v41 = vcombine.high %v693_v38, %v694_v39 }
 0x28d   :  { %v717_v44 = vmul.f32 %v701_v40, %v950_v0  ;;  %v718_v45 = vmul.f32 %v702_v41, %v955_v1 }
 0x28f   :  { %v725_v46 = vround.rtna.f32 %v717_v44  ;;  %v726_v47 = vround.rtna.f32 %v718_v45 }
 0x291   :  { %v909_v48 = vclamps-f32 %v725_v46, 127.0  ;;  %v910_v49 = vclamps-f32 %v726_v47, 127.0 }
 0x293   :  { %v765_v52 = vmul.f32 %v909_v48, %v749_v50  ;;  %v766_v53 = vmul.f32 %v910_v49, %v750_v51 }
 0x295   :  { %v789_v54 = vcombine.low %v765_v52, %v766_v53  ;;  %v790_v55 = vcombine.high %v765_v52, %v766_v53 }
 0x297   :  { %v805_v56 = vsel %vm773_vm6, nan, %v789_v54  ;;  %v806_v57 = vsel %vm774_vm7, nan, %v790_v55 }
 0x298   :  { %v829_v58 = vcombine.low %v805_v56, %v806_v57 }
 0x29a   :  { %v845_v59 = vsel %vm813_vm8, %v950_v0, %v829_v58 }
 0x29b   :  { %891 = vst [vmem:[%s1000_s1] sm:$0xff] %v845_v59 }

</bundles_post_ra>
